<compile_context>
chip_gen: v7x
topology: tpu7x:2x2x1
jax: 0.10.0
libtpu: 0.0.40
codegen_flags: <defaults>
</compile_context>

<pallas_src>
import functools

import jax
import jax.numpy as jnp
import numpy as np
from jax.experimental import pallas as pl
from jax.experimental.pallas import tpu as pltpu

IGNORE_VALUE = -100
GAMMA = 2.0          # static == 2  ->  shrink computed as q*q


def _ce_focal_kernel(logits_ref, aux_ref, out_ref, *, n_rows):
    i = pl.program_id(0)
    tn = logits_ref.shape[0]

    logits = logits_ref[...]                         # (TN, C), input dtype
    labels = aux_ref[:, 0:1]                         # (TN, 1) int32
    scope_any = aux_ref[:, 1:2] != 0                 # (TN, 1) bool

    # rows past N in the (partial) edge block contain garbage -> mask them
    row = jax.lax.broadcasted_iota(jnp.int32, (tn, 1), 0)
    row_valid = (i * tn + row) < n_rows              # (TN, 1) bool

    label_valid = labels != IGNORE_VALUE
    valid = jnp.logical_and(label_valid, row_valid)  # (TN, 1)
    maskf = valid.astype(jnp.float32)
    lab = jnp.where(label_valid, labels, 0)          # clamp ignored rows

    # row max in the input dtype (bf16 max is exact)
    m = jnp.max(logits, axis=1, keepdims=True)       # (TN, 1)

    # upcast only the offset right before exp; accumulate s in f32
    ex = jnp.exp((logits - m).astype(jnp.float32))   # (TN, C) f32
    # NOTE: if the VALU slot saturates, this reduce could be offloaded to the
    # idle MXU as ex @ ones((C, 1)); kept on VPU/XLU here (DMA-bound on v5e).
    s = jnp.sum(ex, axis=1, keepdims=True)           # (TN, 1) f32

    # fused label-logit gather (exact: one nonzero per row)
    col = jax.lax.broadcasted_iota(jnp.int32, logits.shape, 1)
    onehot = col == lab
    logit_lab = jnp.sum(jnp.where(onehot, logits, jnp.zeros_like(logits)),
                        axis=1, keepdims=True)       # (TN, 1), input dtype
    off_lab = (logit_lab - m).astype(jnp.float32)    # (TN, 1) f32

    inv_s = pl.reciprocal(s, approx=True)            # EUP slot, otherwise idle
    p_lab = jnp.exp(off_lab) * inv_s                 # softmax prob of label
    q = 1.0 - p_lab
    shrink = jnp.where(scope_any, q * q, 1.0)        # (1-p)^gamma, gamma=2

    lp_lab = off_lab - jnp.log(s)                    # log-softmax at label

    # select (not multiply) so NaN/Inf from garbage edge rows cannot leak
    l = jnp.where(valid, -lp_lab * shrink, 0.0)      # (TN, 1)

    num = jnp.sum(l, axis=0, keepdims=True)          # (1, 1)
    den = jnp.sum(maskf, axis=0, keepdims=True)      # (1, 1)

    # pack (num, den) into one (1, 1, 2) block -> single writeback per step
    lane = jax.lax.broadcasted_iota(jnp.int32, (1, 2), 1)
    out_ref[...] = jnp.where(lane == 0, num, den).reshape(1, 1, 2)


def _round_up(x, m):
    return (x + m - 1) // m * m


def cross_entropy_focal_loss(logits, labels, scope_mask, block_rows=None):
    """logits: (N, C) float, labels: (N,) int, scope_mask: (N, K) bool/int."""
    N, C = logits.shape

    # pre-reduce scope mask to a per-row flag and pack with labels: one narrow
    # (N, 2) int32 side input -> a single small DMA per grid step.
    scope_any = jnp.any(scope_mask != 0, axis=1).astype(jnp.int32).reshape(N, 1)
    labels_i = labels.astype(jnp.int32).reshape(N, 1)
    aux = jnp.concatenate([labels_i, scope_any], axis=1)        # (N, 2) int32

    # dtype-aware row tile: 2x double-buffered input block + ~2 f32 temporaries
    # kept inside a conservative ~24 MiB working-set budget (v7x-safe).
    itemsize = jnp.dtype(logits.dtype).itemsize
    per_row_bytes = C * (2 * itemsize + 2 * 4) + 512
    budget = 24 * 1024 * 1024
    tn_cap = max(8, min(512, (budget // per_row_bytes) // 8 * 8))

    if block_rows is not None:
        TN = max(8, int(block_rows) // 8 * 8)
    elif N <= tn_cap:
        TN = N                      # single block == full row extent (legal for any N)
    else:
        TN = tn_cap                 # multiple of 8; edge block masked in-kernel
    num_tiles = pl.cdiv(N, TN)

    kernel = functools.partial(_ce_focal_kernel, n_rows=N)

    parts = pl.pallas_call(
        kernel,
        out_shape=jax.ShapeDtypeStruct((num_tiles, 1, 2), jnp.float32),
        grid=(num_tiles,),
        in_specs=[
            pl.BlockSpec((TN, C), lambda i: (i, 0)),   # logits, no HBM padding
            pl.BlockSpec((TN, 2), lambda i: (i, 0)),   # packed labels+scope
        ],
        out_specs=pl.BlockSpec((1, 1, 2), lambda i: (i, 0, 0)),
        compiler_params=pltpu.CompilerParams(
            dimension_semantics=("parallel",),
            vmem_limit_bytes=48 * 1024 * 1024,
        ),
    )(logits, aux)

    # tiny cross-tile finalize in XLA (keeps the grid axis parallel for megacore)
    num = jnp.sum(parts[:, 0, 0])
    den = jnp.sum(parts[:, 0, 1])
    # NOTE: den == 0 (all labels ignored) yields NaN, matching PyTorch mean CE.
    return num / den


def _ref_loss(logits, labels, scope_mask):
    """Pure-numpy reference of the PyTorch forward (weight=None path)."""
    lg = np.asarray(logits, dtype=np.float64)
    lb = np.asarray(labels)
    sm = np.asarray(scope_mask)
    n = lg.shape[0]
    mask = (lb != IGNORE_VALUE).astype(np.float64)
    lb2 = np.where(lb == IGNORE_VALUE, 0, lb)
    off = lg - lg.max(axis=1, keepdims=True)
    ex = np.exp(off)
    s = ex.sum(axis=1, keepdims=True)
    p = ex[np.arange(n), lb2] / s[:, 0]
    shrink = (1.0 - p) ** GAMMA
    shrink = np.where(sm.any(axis=1), shrink, 1.0)
    logp = off - np.log(s)
    l = -logp[np.arange(n), lb2] * shrink * mask
    return l.sum() / mask.sum()


if __name__ == "__main__":
    key = jax.random.PRNGKey(0)

    # --- test 1: small shape, N not a multiple of 8, C not a multiple of 128
    k1, k2, k3 = jax.random.split(key, 3)
    N, C, K = 13, 32, 4
    logits = jax.random.normal(k1, (N, C), dtype=jnp.float32)
    labels = jax.random.randint(k2, (N,), 0, C, dtype=jnp.int32)
    labels = labels.at[3].set(IGNORE_VALUE)            # exercise ignore_value masking
    scope_mask = jax.random.uniform(k3, (N, K)) > 0.5
    scope_mask = scope_mask.at[1, :].set(False)        # off-scope row -> shrink = 1

    loss = cross_entropy_focal_loss(logits, labels, scope_mask)
    jax.block_until_ready(loss)
    ref = _ref_loss(logits, labels, scope_mask)
    assert abs(float(loss) - float(ref)) < 5e-3, (float(loss), float(ref))

    # --- test 2: multi-tile grid with a partial edge block (row masking path)
    k4, k5, k6 = jax.random.split(jax.random.PRNGKey(1), 3)
    N2, C2, K2 = 20, 200, 3
    logits2 = jax.random.normal(k4, (N2, C2), dtype=jnp.float32)
    labels2 = jax.random.randint(k5, (N2,), 0, C2, dtype=jnp.int32)
    labels2 = labels2.at[0].set(IGNORE_VALUE)
    scope_mask2 = jax.random.uniform(k6, (N2, K2)) > 0.5
    scope_mask2 = scope_mask2.at[5, :].set(False)

    loss2 = cross_entropy_focal_loss(logits2, labels2, scope_mask2, block_rows=8)
    jax.block_until_ready(loss2)
    ref2 = _ref_loss(logits2, labels2, scope_mask2)
    assert abs(float(loss2) - float(ref2)) < 5e-3, (float(loss2), float(ref2))

    print("KERNEL_OK")
</pallas_src>

<mosaic_0001>
module attributes {stable_mosaic.version = 11 : i64} {
  func.func @_ce_focal_kernel(%arg0: i32, %arg1: memref<13x32xf32, #tpu.memory_space<vmem>>, %arg2: memref<13x2xi32, #tpu.memory_space<vmem>>, %arg3: memref<1x1x2xf32, #tpu.memory_space<vmem>>) attributes {dimension_semantics = [#tpu.dimension_semantics<parallel>], iteration_bounds = array<i64: 1>, scalar_prefetch = 0 : i64, scratch_operands = 0 : i64, tpu.core_type = #tpu.core_type<tc>, window_params = [{transform_indices = @transform_0, window_bounds = array<i64: 13, 32>}, {transform_indices = @transform_1, window_bounds = array<i64: 13, 2>}, {transform_indices = @transform_2, window_bounds = array<i64: 1, 1, 2>}]} {
    %c0 = arith.constant 0 : index
    %c0_0 = arith.constant 0 : index
    %0 = vector.load %arg1[%c0, %c0_0] : memref<13x32xf32, #tpu.memory_space<vmem>>, vector<13x32xf32>
    %c0_1 = arith.constant 0 : index
    %c0_2 = arith.constant 0 : index
    %1 = vector.load %arg2[%c0_1, %c0_2] : memref<13x2xi32, #tpu.memory_space<vmem>>, vector<13x1xi32>
    %c0_3 = arith.constant 0 : index
    %c1 = arith.constant 1 : index
    %2 = vector.load %arg2[%c0_3, %c1] : memref<13x2xi32, #tpu.memory_space<vmem>>, vector<13x1xi32>
    %c0_i32 = arith.constant 0 : i32
    %3 = vector.broadcast %c0_i32 : i32 to vector<13x1xi32>
    %4 = arith.cmpi ne, %2, %3 : vector<13x1xi32>
    %5 = tpu.iota {dimensions = array<i32: 0>} : vector<13x1xi32>
    %c13_i32 = arith.constant 13 : i32
    %6 = arith.muli %arg0, %c13_i32 : i32
    %7 = vector.broadcast %6 : i32 to vector<13x1xi32>
    %8 = arith.addi %7, %5 : vector<13x1xi32>
    %c13_i32_4 = arith.constant 13 : i32
    %9 = vector.broadcast %c13_i32_4 : i32 to vector<13x1xi32>
    %10 = arith.cmpi slt, %8, %9 : vector<13x1xi32>
    %c-100_i32 = arith.constant -100 : i32
    %11 = vector.broadcast %c-100_i32 : i32 to vector<13x1xi32>
    %12 = arith.cmpi ne, %1, %11 : vector<13x1xi32>
    %13 = arith.andi %12, %10 : vector<13x1xi1>
    %14 = arith.extui %13 : vector<13x1xi1> to vector<13x1xi32>
    %15 = arith.sitofp %14 : vector<13x1xi32> to vector<13x1xf32>
    %c0_i32_5 = arith.constant 0 : i32
    %16 = vector.broadcast %c0_i32_5 : i32 to vector<13x1xi32>
    %17 = arith.select %12, %1, %16 : vector<13x1xi1>, vector<13x1xi32>
    %cst = arith.constant dense<0xFF800000> : vector<13xf32>
    %18 = vector.multi_reduction <maximumf>, %0, %cst [1] : vector<13x32xf32> to vector<13xf32>
    %19 = vector.shape_cast %18 : vector<13xf32> to vector<13x1xf32>
    %20 = vector.broadcast %19 : vector<13x1xf32> to vector<13x32xf32>
    %21 = arith.subf %0, %20 : vector<13x32xf32>
    %22 = math.exp %21 : vector<13x32xf32>
    %cst_6 = arith.constant dense<0.000000e+00> : vector<13xf32>
    %23 = vector.multi_reduction <add>, %22, %cst_6 [1] : vector<13x32xf32> to vector<13xf32>
    %24 = vector.shape_cast %23 : vector<13xf32> to vector<13x1xf32>
    %25 = tpu.iota {dimensions = array<i32: 1>} : vector<13x32xi32>
    %26 = vector.broadcast %17 : vector<13x1xi32> to vector<13x32xi32>
    %27 = arith.cmpi eq, %25, %26 : vector<13x32xi32>
    %cst_7 = arith.constant 0.000000e+00 : f32
    %28 = vector.broadcast %cst_7 : f32 to vector<13x32xf32>
    %29 = arith.select %27, %0, %28 : vector<13x32xi1>, vector<13x32xf32>
    %cst_8 = arith.constant dense<0.000000e+00> : vector<13xf32>
    %30 = vector.multi_reduction <add>, %29, %cst_8 [1] : vector<13x32xf32> to vector<13xf32>
    %31 = vector.shape_cast %30 : vector<13xf32> to vector<13x1xf32>
    %32 = arith.subf %31, %19 : vector<13x1xf32>
    %33 = tpu.reciprocal %24 {approx = true} : vector<13x1xf32> -> vector<13x1xf32>
    %34 = math.exp %32 : vector<13x1xf32>
    %35 = arith.mulf %34, %33 : vector<13x1xf32>
    %cst_9 = arith.constant 1.000000e+00 : f32
    %36 = vector.broadcast %cst_9 : f32 to vector<13x1xf32>
    %37 = arith.subf %36, %35 : vector<13x1xf32>
    %38 = arith.mulf %37, %37 : vector<13x1xf32>
    %cst_10 = arith.constant 1.000000e+00 : f32
    %39 = vector.broadcast %cst_10 : f32 to vector<13x1xf32>
    %40 = arith.select %4, %38, %39 : vector<13x1xi1>, vector<13x1xf32>
    %41 = math.log %24 : vector<13x1xf32>
    %42 = arith.subf %32, %41 : vector<13x1xf32>
    %cst_11 = arith.constant 0.000000e+00 : f32
    %43 = vector.broadcast %cst_11 : f32 to vector<13x1xf32>
    %44 = arith.subf %43, %42 : vector<13x1xf32>
    %45 = arith.mulf %44, %40 : vector<13x1xf32>
    %cst_12 = arith.constant 0.000000e+00 : f32
    %46 = vector.broadcast %cst_12 : f32 to vector<13x1xf32>
    %47 = arith.select %13, %45, %46 : vector<13x1xi1>, vector<13x1xf32>
    %cst_13 = arith.constant dense<0.000000e+00> : vector<1xf32>
    %48 = vector.multi_reduction <add>, %47, %cst_13 [0] : vector<13x1xf32> to vector<1xf32>
    %49 = vector.shape_cast %48 : vector<1xf32> to vector<1x1xf32>
    %cst_14 = arith.constant dense<0.000000e+00> : vector<1xf32>
    %50 = vector.multi_reduction <add>, %15, %cst_14 [0] : vector<13x1xf32> to vector<1xf32>
    %51 = vector.shape_cast %50 : vector<1xf32> to vector<1x1xf32>
    %52 = tpu.iota {dimensions = array<i32: 1>} : vector<1x2xi32>
    %c0_i32_15 = arith.constant 0 : i32
    %53 = vector.broadcast %c0_i32_15 : i32 to vector<1x2xi32>
    %54 = arith.cmpi eq, %52, %53 : vector<1x2xi32>
    %55 = vector.shape_cast %49 : vector<1x1xf32> to vector<1x1xf32>
    %56 = vector.broadcast %55 : vector<1x1xf32> to vector<1x2xf32>
    %57 = vector.shape_cast %51 : vector<1x1xf32> to vector<1x1xf32>
    %58 = vector.broadcast %57 : vector<1x1xf32> to vector<1x2xf32>
    %59 = arith.select %54, %56, %58 : vector<1x2xi1>, vector<1x2xf32>
    %60 = vector.shape_cast %59 : vector<1x2xf32> to vector<1x1x2xf32>
    %c0_16 = arith.constant 0 : index
    %c0_17 = arith.constant 0 : index
    %c0_18 = arith.constant 0 : index
    %61 = vector.load %arg3[%c0_16, %c0_17, %c0_18] : memref<1x1x2xf32, #tpu.memory_space<vmem>>, vector<1x1x2xf32>
    tpu.vector_store %arg3[%c0_16, %c0_17, %c0_18], %60 {strides = array<i32>} : memref<1x1x2xf32, #tpu.memory_space<vmem>>, vector<1x1x2xf32>,
    return
  }
  func.func @transform_0(%arg0: i32) -> (i32, i32) {
    %c0_i32 = arith.constant 0 : i32
    %c0_i32_0 = arith.constant 0 : i32
    return %arg0, %c0_i32 : i32, i32
  }
  func.func @transform_1(%arg0: i32) -> (i32, i32) {
    %c0_i32 = arith.constant 0 : i32
    %c0_i32_0 = arith.constant 0 : i32
    return %arg0, %c0_i32 : i32, i32
  }
  func.func @transform_2(%arg0: i32) -> (i32, i32, i32) {
    %c0_i32 = arith.constant 0 : i32
    %c0_i32_0 = arith.constant 0 : i32
    %c0_i32_1 = arith.constant 0 : i32
    return %arg0, %c0_i32, %c0_i32_0 : i32, i32, i32
  }
}

</mosaic_0001>

<bundles_post_ra>
// kernel: tpu_custom_call.1
= control target key start
LH: loop header
LB: loop body
LE: loop exit
PB: predicated region body
PF: predicated region fallthrough
CT: control target
= control target key end

     0   :  { %vm37_vm0 = vcmask 261120   ;;  %v207_v3 = vmov 0   ;;  %vm41_vm2 = vcmask 258048   ;;  %s293_s0 = inlined_call_operand.vmem [shape: f32[13,32], index: 0, kind: input, shape index: {}]   ;;  %s294_s1 = inlined_call_operand.vmem [shape: s32[13,2], index: 1, kind: input, shape index: {}]   ;;  %s295_s2 = inlined_call_operand.hbm [shape: f32[1,1,2], index: 2, kind: output, shape index: {}]  }
   0x1   :  { %v12_v0 = vld [vmem:[%s293_s0] sm:$0xff]  ;;  %v13_v2 = vld [vmem:[%s293_s0 + $0x8] sm:$0x1f]  ;;  %165 = vset.pattern.permute.xlu1 %v207_v3  ;;  %166 = vset.pattern.permute.xlu0 %v207_v3 }
   0x2   :  { %v232_v1 = vld [vmem:[%s294_s1] sm:$0xff]  ;;  %v38_v4 = vsel %vm37_vm0, %v12_v0, -inf  ;;  %v242_v5 = vld [vmem:[%s294_s1 + $0x8] sm:$0x1f] }
   0x3   :  { %vm27_vm1 = vcmp.ne.s32.totalorder %v232_v1, 4294967196  ;;  %39 = vmax.xlane.f32.xlu0 %v38_v4  ;;  %vm28_vm3 = vcmp.ne.s32.totalorder %v242_v5, 4294967196 }
   0x4   :  { %v35_v6 = vsel %vm27_vm1, %v232_v1, 0 }
   0x5   :  { %7 = vsyncpa [#allocation3], 0  ;;  %60 = vperm.xlu1 %165, %v35_v6   ;;  %v42_v7 = vsel %vm41_vm2, %v13_v2, -inf  ;;  %v36_v8 = vsel %vm28_vm3, %v242_v5, 0  ;;  %v18_v9 = vlaneseq  ;;  %v208_v36 = vmov 0.0   ;;  %s209_s0 = smov 127  }
   0x6   :  { %v159_v37 = vsel %vm27_vm1, 1.0, %v208_v36  ;;  %vm111_vm6 = vcmask 7168   ;;  %vm113_vm8 = vcmask 4096   ;;  %vm16_vm10 = vcmp.ne.s32.totalorder %v232_v1, 0  ;;  %s210_s1 = smov [#allocation2]  }
   0x7   :  { %43 = vmax.xlane.f32.xlu0 %v42_v7  ;;  %v252_v10 = vand.u32 127, %v18_v9  ;;  %v19_v35 = vshrl.u32 %v18_v9, 7  ;;  %v122_v43 = vsel %vm111_vm6, %v159_v37, 0.0  ;;  %vm17_vm11 = vcmp.ne.s32.totalorder %v242_v5, 0  ;;  %s151_s17 = sshll.u32 %s210_s1, 4  ;;  %s152_s17 = int_to_ptr.vmem [resolvable:$true] %s151_s17 }
   0x8   :  { %vm143_vm13 = vcmask 8192   ;;  %s183_s18 = scalar_lea.vmem %s152_s17, 16  ;;  %s187_s19 = scalar_lea.vmem %s152_s17, 32 }
   0x9   :  { %63 = vperm.xlu1 %165, %v36_v8   ;;  %v20_v38 = vadd.s32 8, %v19_v35  ;;  %vm131_vm12 = vcmp.eq.s32.totalorder %v252_v10, 0  ;;  %p184_p0 = scmp.ne.s32.totalorder %s152_s17, %s183_s18  ;;  %p188_p1 = scmp.lt.s32.totalorder %s152_s17, %s152_s17 }
   0xa   :  { %p189_p2 = scmp.lt.s32.totalorder %s187_s19, %s183_s18 }
   0xb   :  { %vm26_vm7 = vcmp.lt.s32.totalorder %v20_v38, 13 }
   0xc   :  { %vm265_vm9 = vmand %vm28_vm3, %vm26_vm7  ;;  %p190_p3 = por %p189_p2, %p188_p1 }
   0xd   :  { %v160_v46 = vsel %vm265_vm9, 1.0, %v208_v36 }
   0xe   :  { %v123_v49 = vsel %vm113_vm8, %v160_v46, 0.0  ;;  %p191_p4 = pnand %p190_p3, %p184_p0 }
   0xf   :  { %v124_v52 = vadd.f32 %v123_v49, %v122_v43 }
  0x11   :  { %v125_v58 = vrot.slane %v124_v52, 4 }
  0x13   :  { %v126_v63 = vadd.f32 %v125_v58, %v124_v52 }
  0x15   :  { %v127_v3 = vrot.slane %v126_v63, 2 }
  0x17   :  { %v128_v7 = vadd.f32 %v127_v3, %v126_v63 }
  0x19   :  { %v129_v8 = vrot.slane %v128_v7, 1 }
  0x1b   :  { %v130_v9 = vadd.f32 %v129_v8, %v128_v7 }
  0x84   :  { %v61_v11 = vpop.permute.xlu1 %60 }
  0x85   :  { %vm65_vm4 = vcmp.eq.s32.totalorder %v252_v10, %v61_v11 }
  0x86   :  { %v67_v12 = vsel %vm65_vm4, %v12_v0, 0.0 }
  0x87   :  { %v69_v13 = vsel %vm37_vm0, %v67_v12, 0.0 }
  0x88   :  { %v64_v14 = vpop.permute.xlu1 %63  ;;  %70 = vadd.xlane.f32.xlu0 %v69_v13 }
  0x89   :  { %vm66_vm5 = vcmp.eq.s32.totalorder %v252_v10, %v64_v14 }
  0x8a   :  { %v68_v15 = vsel %vm66_vm5, %v13_v2, 0.0 }
  0x8b   :  { %v72_v16 = vsel %vm41_vm2, %v68_v15, 0.0 }
  0x8c   :  { %73 = vadd.xlane.f32.xlu1 %v72_v16 }
  0x90   :  { %v40_v17 = vpop.xlane.xlu0 %39 }
  0x91   :  { %v45_v18 = vsub.f32 %v12_v0, %v40_v17 }
  0x93   :  { %v47_v19 = vmul.f32 1.442695, %v45_v18 }
  0x94   :  { %v44_v20 = vpop.xlane.xlu0 %43 }
  0x95   :  { %167 = vpow2.f32 %v47_v19  ;;  %v46_v21 = vsub.f32 %v13_v2, %v44_v20 }
  0x97   :  { %v49_v22 = vmul.f32 1.442695, %v46_v21 }
  0x99   :  { %169 = vpow2.f32 %v49_v22 }
  0x9f   :  { %v168_v23 = vpop.eup %167 }
  0xa0   :  { %v51_v24 = vsel %vm37_vm0, %v168_v23, 0.0 }
  0xa1   :  { %52 = vadd.xlane.f32.xlu0 %v51_v24 }
  0xa3   :  { %v170_v25 = vpop.eup %169 }
  0xa4   :  { %v54_v26 = vsel %vm41_vm2, %v170_v25, 0.0 }
  0xa5   :  { %55 = vadd.xlane.f32.xlu0 %v54_v26 }
 0x115   :  { %v71_v27 = vpop.xlane.xlu0 %70 }
 0x116   :  { %v75_v28 = vsub.f32 %v71_v27, %v40_v17 }
 0x118   :  { %v79_v30 = vmul.f32 1.442695, %v75_v28 }
 0x119   :  { %v74_v29 = vpop.xlane.xlu1 %73 }
 0x11a   :  { %v76_v31 = vsub.f32 %v74_v29, %v44_v20  ;;  %171 = vpow2.f32 %v79_v30 }
 0x11c   :  { %v81_v32 = vmul.f32 1.442695, %v76_v31 }
 0x124   :  { %v172_v39 = vpop.eup %171 }
 0x12e   :  { %v53_v33 = vpop.xlane.xlu0 %52 }
 0x12f   :  { %173 = vrcp.f32 %v53_v33 }
 0x130   :  { %175 = vlog2.f32 %v53_v33 }
 0x131   :  { %177 = vpow2.f32 %v81_v32 }
 0x132   :  { %v56_v34 = vpop.xlane.xlu0 %55 }
 0x133   :  { %179 = vrcp.f32 %v56_v34 }
 0x134   :  { %181 = vlog2.f32 %v56_v34 }
 0x139   :  { %v174_v40 = vpop.eup %173 }
 0x13a   :  { %v176_v41 = vpop.eup %175  ;;  %v83_v42 = vmul.f32 %v174_v40, %v172_v39 }
 0x13b   :  { %v92_v45 = vmul.f32 0.6931472, %v176_v41  ;;  %v178_v47 = vpop.eup %177 }
 0x13c   :  { %v85_v48 = vsub.f32 1.0, %v83_v42 }
 0x13d   :  { %v180_v50 = vpop.eup %179  ;;  %v95_v51 = vsub.f32 %v75_v28, %v92_v45 }
 0x13e   :  { %v182_v53 = vpop.eup %181  ;;  %v87_v54 = vmul.f32 %v85_v48, %v85_v48  ;;  %v84_v55 = vmul.f32 %v180_v50, %v178_v47 }
 0x13f   :  { %v94_v56 = vmul.f32 0.6931472, %v182_v53  ;;  %v97_v57 = vsub.f32 0.0, %v95_v51 }
 0x140   :  { %v89_v59 = vsel %vm16_vm10, %v87_v54, 1.0  ;;  %v86_v60 = vsub.f32 1.0, %v84_v55 }
 0x141   :  { %v99_v61 = vmul.f32 %v97_v57, %v89_v59  ;;  %v96_v62 = vsub.f32 %v76_v31, %v94_v56 }
 0x142   :  { %v88_v0 = vmul.f32 %v86_v60, %v86_v60 }
 0x143   :  { %103 = vrot.lane.b32.xlu0 %v99_v61, %s209_s0  ;;  %v98_v2 = vsub.f32 0.0, %v96_v62 }
 0x144   :  { %v90_v4 = vsel %vm17_vm11, %v88_v0, 1.0 }
 0x145   :  { %v100_v6 = vmul.f32 %v98_v2, %v90_v4 }
 0x147   :  { %105 = vrot.lane.b32.xlu0 %v100_v6, %s209_s0 }
 0x14b   :  { %139 = vperm.xlu0 %166, %v130_v9  }
 0x1b5   :  { %v104_v11 = vpop.permute.xlu0 %103 }
 0x1b6   :  { %v109_v12 = vsel %vm27_vm1, %v104_v11, 0.0 }
 0x1b7   :  { %v112_v14 = vsel %vm111_vm6, %v109_v12, 0.0 }
 0x1b9   :  { %v106_v13 = vpop.permute.xlu0 %105 }
 0x1ba   :  { %v110_v5 = vsel %vm265_vm9, %v106_v13, 0.0 }
 0x1bb   :  { %v114_v15 = vsel %vm113_vm8, %v110_v5, 0.0 }
 0x1bc   :  { %v115_v16 = vadd.f32 %v114_v15, %v112_v14 }
 0x1be   :  { %v116_v17 = vrot.slane %v115_v16, 4 }
 0x1c0   :  { %v117_v18 = vadd.f32 %v116_v17, %v115_v16 }
 0x1c2   :  { %v118_v19 = vrot.slane %v117_v18, 2 }
 0x1c4   :  { %v119_v20 = vadd.f32 %v118_v19, %v117_v18 }
 0x1c6   :  { %v120_v21 = vrot.slane %v119_v20, 1 }
 0x1c8   :  { %v121_v22 = vadd.f32 %v120_v21, %v119_v20 }
 0x1ca   :  { %134 = vperm.xlu1 %165, %v121_v22   ;;  %v140_v1 = vpop.permute.xlu0 %139 }
 0x249   :  { %v135_v23 = vpop.permute.xlu1 %134 }
 0x24a   :  { %v142_v24 = vsel %vm131_vm12, %v135_v23, %v140_v1 }
 0x24b   :  { %144 = vst.msk [vmem:[#allocation2] sm:$0x1] %vm143_vm13, %v142_v24 }
 0x24c   :  { %194 = shalt.err (!%p191_p4)
}
 0x24d   :  { %s195_s22 = scalar_lea.hbm %s295_s2, 16 }
 0x24e   :  { %p196_p5 = scmp.ne.s32.totalorder %s295_s2, %s195_s22  ;;  %p199_p6 = scmp.lt.u32.totalorder %s195_s22, %s295_s2 }
 0x250   :  { %p201_p7 = pnand %p199_p6, %p196_p5 }
 0x252   :  { %204 = shalt.err (!%p201_p7)
}
 0x253   :  { %154 = dma.vmem_to_hbm [thread:$0]  %s152_s17, 16, %s295_s2, [#allocation3]  }
 0x254   :  { %205 = dma.done.wait [#allocation3], 16  }
 0x255   :  { %206 = vsyncadd [#allocation3], 4294967280 }
 0x256   :  { %158 = vsyncpa [#allocation3], 1 }

</bundles_post_ra>
